<compile_context>
chip_gen: v7x
topology: tpu7x:2x2x1
jax: 0.10.0
libtpu: 0.0.40
codegen_flags: <defaults>
</compile_context>

<pallas_src>
import functools

import jax
import jax.numpy as jnp
from jax.experimental import pallas as pl
from jax.experimental.pallas import tpu as pltpu

LANE = 128  # TPU lane width


def _round_up(x: int, m: int) -> int:
    return (x + m - 1) // m * m


def _mlp_kernel(x_ref, p_ref, o_ref, *, s_aug, h_pad, off_w2):
    """y = relu(x_aug @ W1_aug) @ W2_aug (biases pre-folded into the weights)."""
    w1 = p_ref[0:s_aug, :]                     # (S_aug, 128)  fc1 weight + b1 row
    w2 = p_ref[off_w2:off_w2 + h_pad, :]       # (128, 128)    out weight + b2 row
    hid = jnp.dot(x_ref[...], w1,
                  preferred_element_type=jnp.float32,
                  precision=jax.lax.Precision.HIGHEST)
    hid = jnp.maximum(hid, 0.0)                # constant-1 hidden unit survives relu
    o_ref[...] = jnp.dot(hid, w2,
                         preferred_element_type=jnp.float32,
                         precision=jax.lax.Precision.HIGHEST).astype(o_ref.dtype)


def pack_params(w1, b1, w2, b2):
    """Fold biases into the weights and pack into one lane-dense (R, 128) buffer.

    Layout (f32, lane width 128):
      rows [0, S)        : w1             (cols [0, H))
      row  S             : b1             (cols [0, H)),  1.0 at col H
      rows [S+1, S_aug)  : zeros
      rows [off_w2, +H)  : w2             (cols [0, A))
      row  off_w2 + H    : b2             (cols [0, A))
      remaining rows     : zeros
    The augmented input x_aug = [x | 1 | 0...] makes the two matmuls compute
    exactly fc1(x)+b1 and out(.)+b2; all padded columns stay exactly zero.
    """
    S, H = w1.shape
    H2, A = w2.shape
    assert H2 == H and A <= LANE and H + 1 <= LANE, "packing assumes small H, A"

    s_aug = _round_up(S + 1, 8)                # ones column lives at index S
    w1a = jnp.zeros((s_aug, LANE), jnp.float32)
    w1a = w1a.at[0:S, 0:H].set(w1.astype(jnp.float32))
    w1a = w1a.at[S, 0:H].set(b1.reshape(-1).astype(jnp.float32))
    w1a = w1a.at[S, H].set(1.0)                # constant-1 hidden unit (carries b2)

    w2a = jnp.zeros((LANE, LANE), jnp.float32)
    w2a = w2a.at[0:H, 0:A].set(w2.astype(jnp.float32))
    w2a = w2a.at[H, 0:A].set(b2.reshape(-1).astype(jnp.float32))

    params = jnp.concatenate([w1a, w2a], axis=0)      # (s_aug + 128, 128)
    meta = dict(n_states=S, n_actions=A, s_aug=s_aug, off_w2=s_aug, h_pad=LANE)
    return params, meta


def nn_net_forward(x, params, meta, *, block_b=256):
    """Pallas forward for NN_Net.

    block_b: batch tile (rows). 256 matches the v6e/v7x MXU; use 128 on v5e.
    """
    B = x.shape[0]
    S, A, s_aug = meta["n_states"], meta["n_actions"], meta["s_aug"]
    R = params.shape[0]

    bb = max(8, min(block_b, _round_up(B, 8)))
    b_pad = _round_up(B, bb)

    # Augment + pad the batch on the host side (cheap XLA ops).
    xa = jnp.zeros((b_pad, s_aug), jnp.float32)
    xa = xa.at[:B, :S].set(x.astype(jnp.float32))
    xa = xa.at[:B, S].set(1.0)                 # bias-fold ones column

    kernel = functools.partial(
        _mlp_kernel, s_aug=s_aug, h_pad=meta["h_pad"], off_w2=meta["off_w2"])

    flops = 2 * b_pad * (s_aug * LANE + LANE * LANE)
    bytes_accessed = 4 * (xa.size + params.size + b_pad * LANE)

    y = pl.pallas_call(
        kernel,
        out_shape=jax.ShapeDtypeStruct((b_pad, LANE), jnp.float32),
        grid=(b_pad // bb,),
        in_specs=[
            pl.BlockSpec((bb, s_aug), lambda i: (i, 0)),   # batch tile of x_aug
            pl.BlockSpec((R, LANE), lambda i: (0, 0)),     # params: same block
            # every step -> DMA'd once, VMEM-resident across all batch tiles.
        ],
        out_specs=pl.BlockSpec((bb, LANE), lambda i: (i, 0)),  # lane-dense store
        compiler_params=pltpu.CompilerParams(
            dimension_semantics=("parallel",)),            # v7x: split tiles over TCs
        cost_estimate=pl.CostEstimate(
            flops=flops, transcendentals=0, bytes_accessed=bytes_accessed),
    )(xa, params)

    return y[:B, :A]


if __name__ == "__main__":
    # Small DQN-style sizes: n_states=4, n_hidden=32, n_actions=2.
    n_states, n_hidden, n_actions = 4, 32, 2

    key = jax.random.PRNGKey(0)
    kx, k1, k2, k3, k4, kx2 = jax.random.split(key, 6)

    # Deterministic parameter init (PyTorch-Linear-style uniform bounds).
    bound1 = 1.0 / (n_states ** 0.5)
    w1 = jax.random.uniform(k1, (n_states, n_hidden), jnp.float32, -bound1, bound1)
    b1 = jax.random.uniform(k2, (1, n_hidden), jnp.float32, -bound1, bound1)
    bound2 = 1.0 / (n_hidden ** 0.5)
    w2 = jax.random.uniform(k3, (n_hidden, n_actions), jnp.float32, -bound2, bound2)
    b2 = jax.random.uniform(k4, (1, n_actions), jnp.float32, -bound2, bound2)

    # Pack once (persists across DQN steps); one lane-dense param DMA per call.
    params, meta = pack_params(w1, b1, w2, b2)
    params = jax.block_until_ready(params)

    def ref_fn(xv):
        return jnp.maximum(xv @ w1 + b1, 0.0) @ w2 + b2

    # (1) Tiny rollout-style batch (spec shape).
    x_small = jax.random.normal(kx, (2, n_states), dtype=jnp.float32)
    out_small = jax.block_until_ready(nn_net_forward(x_small, params, meta))
    assert out_small.shape == (2, n_actions)
    assert jnp.allclose(out_small, ref_fn(x_small), atol=1e-5), "small-batch mismatch"

    # (2) Training-minibatch-sized batch: exercises the batch-tile grid and the
    #     VMEM-resident param block across grid steps.
    x_big = jax.random.normal(kx2, (300, n_states), dtype=jnp.float32)
    out_big = jax.block_until_ready(nn_net_forward(x_big, params, meta))
    assert out_big.shape == (300, n_actions)
    assert jnp.allclose(out_big, ref_fn(x_big), atol=1e-5), "big-batch mismatch"

    print("KERNEL_OK")
</pallas_src>

<mosaic_0001>
module attributes {stable_mosaic.version = 11 : i64} {
  func.func @_mlp_kernel(%arg0: i32, %arg1: memref<8x8xf32, #tpu.memory_space<vmem>>, %arg2: memref<136x128xf32, #tpu.memory_space<vmem>>, %arg3: memref<8x128xf32, #tpu.memory_space<vmem>>) attributes {dimension_semantics = [#tpu.dimension_semantics<parallel>], iteration_bounds = array<i64: 1>, scalar_prefetch = 0 : i64, scratch_operands = 0 : i64, tpu.core_type = #tpu.core_type<tc>, window_params = [{transform_indices = @transform_0, window_bounds = array<i64: 8, 8>}, {pipeline_mode = #tpu.pipeline_mode<synchronous>, transform_indices = @transform_1, window_bounds = array<i64: 136, 128>}, {transform_indices = @transform_2, window_bounds = array<i64: 8, 128>}]} {
    %c0 = arith.constant 0 : index
    %c0_0 = arith.constant 0 : index
    %0 = vector.load %arg2[%c0, %c0_0] : memref<136x128xf32, #tpu.memory_space<vmem>>, vector<8x128xf32>
    %c8 = arith.constant 8 : index
    %c0_1 = arith.constant 0 : index
    %1 = vector.load %arg2[%c8, %c0_1] : memref<136x128xf32, #tpu.memory_space<vmem>>, vector<128x128xf32>
    %c0_2 = arith.constant 0 : index
    %c0_3 = arith.constant 0 : index
    %2 = vector.load %arg1[%c0_2, %c0_3] : memref<8x8xf32, #tpu.memory_space<vmem>>, vector<8x8xf32>
    %cst = arith.constant dense<0.000000e+00> : vector<8x128xf32>
    %3 = tpu.matmul %2, %0, %cst {dimension_numbers = #tpu.dot_dimension_numbers<[1], [0], [0], [1], [0, 0, 1, 1], [], []>, precision = #tpu.contract_precision<fp32>} : vector<8x8xf32>, vector<8x128xf32>, vector<8x128xf32> -> vector<8x128xf32>
    %cst_4 = arith.constant 0.000000e+00 : f32
    %4 = vector.broadcast %cst_4 : f32 to vector<8x128xf32>
    %5 = arith.maximumf %3, %4 : vector<8x128xf32>
    %cst_5 = arith.constant dense<0.000000e+00> : vector<8x128xf32>
    %6 = tpu.matmul %5, %1, %cst_5 {dimension_numbers = #tpu.dot_dimension_numbers<[1], [0], [0], [1], [0, 0, 1, 1], [], []>, precision = #tpu.contract_precision<fp32>} : vector<8x128xf32>, vector<128x128xf32>, vector<8x128xf32> -> vector<8x128xf32>
    %c0_6 = arith.constant 0 : index
    %c0_7 = arith.constant 0 : index
    %7 = vector.load %arg3[%c0_6, %c0_7] : memref<8x128xf32, #tpu.memory_space<vmem>>, vector<8x128xf32>
    tpu.vector_store %arg3[%c0_6, %c0_7], %6 {strides = array<i32>} : memref<8x128xf32, #tpu.memory_space<vmem>>, vector<8x128xf32>,
    return
  }
  func.func @transform_0(%arg0: i32) -> (i32, i32) {
    %c0_i32 = arith.constant 0 : i32
    %c0_i32_0 = arith.constant 0 : i32
    return %arg0, %c0_i32 : i32, i32
  }
  func.func @transform_1(%arg0: i32) -> (i32, i32) {
    %c0_i32 = arith.constant 0 : i32
    %c0_i32_0 = arith.constant 0 : i32
    %c0_i32_1 = arith.constant 0 : i32
    return %c0_i32, %c0_i32_0 : i32, i32
  }
  func.func @transform_2(%arg0: i32) -> (i32, i32) {
    %c0_i32 = arith.constant 0 : i32
    %c0_i32_0 = arith.constant 0 : i32
    return %arg0, %c0_i32 : i32, i32
  }
}

</mosaic_0001>

<bundles_post_ra>
// kernel: tpu_custom_call.1
= control target key start
LH: loop header
LB: loop body
LE: loop exit
PB: predicated region body
PF: predicated region fallthrough
CT: control target
= control target key end

     0   :  { %7 = vsyncpa [#allocation3], 0  ;;  %s2110_s0 = inlined_call_operand.hbm [shape: f32[8,8], index: 0, kind: input, shape index: {}]   ;;  %s2111_s1 = inlined_call_operand.hbm [shape: f32[136,128], index: 1, kind: input, shape index: {}]   ;;  %s2112_s2 = inlined_call_operand.hbm [shape: f32[8,128], index: 2, kind: output, shape index: {}]  }
   0x1   :  { %8 = vsyncpa [#allocation6], 0 }
   0x2   :  { %9 = vsyncpa [#allocation4], 0  ;;  %s1761_s9 = smov [#allocation2]   ;;  %s1762_s11 = smov [#allocation5]  }
   0x3   :  { %s16_s10 = sshll.u32 %s1761_s9, 4  ;;  %s25_s12 = sshll.u32 %s1762_s11, 4  ;;  %s17_s10 = int_to_ptr.vmem [resolvable:$true] %s16_s10  ;;  %s1784_s12 = int_to_ptr.vmem [resolvable:$true] %s25_s12 }
   0x4   :  { %s1689_s15 = scalar_lea.hbm %s2110_s0, 128 }
   0x5   :  { %p1690_p0 = scmp.ne.s32.totalorder %s2110_s0, %s1689_s15  ;;  %p1693_p1 = scmp.lt.u32.totalorder %s1689_s15, %s2110_s0 }
   0x7   :  { %p1695_p2 = pnand %p1693_p1, %p1690_p0 }
   0x9   :  { %1698 = shalt.err (!%p1695_p2)
}
   0xa   :  { %s1699_s20 = scalar_lea.vmem %s17_s10, 128  ;;  %p1704_p4 = scmp.lt.s32.totalorder %s17_s10, %s17_s10 }
   0xb   :  { %p1700_p3 = scmp.ne.s32.totalorder %s17_s10, %s1699_s20  ;;  %p1705_p5 = scmp.lt.s32.totalorder %s1699_s20, %s1699_s20 }
   0xd   :  { %p1706_p6 = por %p1705_p5, %p1704_p4 }
   0xf   :  { %p1707_p7 = pnand %p1706_p6, %p1700_p3 }
  0x11   :  { %1710 = shalt.err (!%p1707_p7)
}
  0x12   :  { %19 = dma.hbm_to_vmem [thread:$0]  %s2110_s0, 128, %s17_s10, [#allocation3]  }
  0x13   :  { %s1711_s25 = scalar_lea.hbm %s2111_s1, 2176 }
  0x14   :  { %p1712_p8 = scmp.ne.s32.totalorder %s2111_s1, %s1711_s25  ;;  %p1715_p9 = scmp.lt.u32.totalorder %s1711_s25, %s2111_s1 }
  0x16   :  { %p1717_p10 = pnand %p1715_p9, %p1712_p8 }
  0x18   :  { %1720 = shalt.err (!%p1717_p10)
}
  0x19   :  { %s1721_s30 = scalar_lea.vmem %s1784_s12, 2176  ;;  %p1726_p12 = scmp.lt.s32.totalorder %s1784_s12, %s1784_s12 }
  0x1a   :  { %p1722_p11 = scmp.ne.s32.totalorder %s1784_s12, %s1721_s30  ;;  %p1727_p13 = scmp.lt.s32.totalorder %s1721_s30, %s1721_s30 }
  0x1c   :  { %p1728_p0 = por %p1727_p13, %p1726_p12 }
  0x1e   :  { %p1729_p1 = pnand %p1728_p0, %p1722_p11 }
  0x20   :  { %1732 = shalt.err (!%p1729_p1)
}
  0x21   :  { %s1763_s0 = smov 128   ;;  %s1764_s3 = smov 8  }
  0x22   :  { %31 = dma.hbm_to_vmem [thread:$0]  %s2111_s1, 2176, %s1784_s12, [#allocation6], %s1763_s0, %s1763_s0, %s1764_s3  }
  0x23   :  { %1755 = dma.done.wait [#allocation3], 128  }
  0x24   :  { %1756 = vsyncadd [#allocation3], 4294967168 }
  0x25   :  { %1757 = dma.done.wait [#allocation6], 2176  }
  0x26   :  { %1758 = vsyncadd [#allocation6], 4294965120  ;;  %v1765_v0 = vmov 0.0   ;;  %vm1766_vm0 = vmmov 0   ;;  %vm56_vm1 = vcmask 64512   ;;  %v38_v1 = vld [vmem:[#allocation5] sm:$0xff] }
  0x27   :  { %1294 = vmatprep.subr.mxu0 %v1765_v0  ;;  %1296 = vmatprep.mubr.msk.f32.mxu0 %vm1766_vm0, %v1765_v0  ;;  %v55_v2 = vld [vmem:[#allocation2] sm:$0xff]  ;;  %v1821_v3 = vld [vmem:[#allocation5 + $0x8] sm:$0xff]  ;;  %v61_v4 = vand.u32 4294901760, %v38_v1  ;;  %v40_v6 = vld [vmem:[#allocation5 + $0x10] sm:$0xff]  ;;  %v1767_v44 = vmov 0.0|0.0   ;;  %s1768_s1 = smov [#allocation7]  }
  0x28   :  { %1279 = vmatprep.subr.mxu1 %v1765_v0  ;;  %1281 = vmatprep.mubr.msk.f32.mxu1 %vm1766_vm0, %v1765_v0  ;;  %v58_v5 = vsel %vm56_vm1, %v55_v2, 0  ;;  %v508_v7 = vand.u32 4294901760, %v1821_v3  ;;  %v1824_v8 = vld [vmem:[#allocation5 + $0x18] sm:$0xff]  ;;  %v42_v9 = vld [vmem:[#allocation5 + $0x20] sm:$0xff]  ;;  %v511_v11 = vand.u32 4294901760, %v40_v6  ;;  %v1826_v12 = vld [vmem:[#allocation5 + $0x28] sm:$0xff] }
  0x29   :  { %v126_v10 = vand.u32 4294901760, %v58_v5  ;;  %v1828_v13 = vld [vmem:[#allocation5 + $0x30] sm:$0xff]  ;;  %v138_v14 = vsub.f32 %v38_v1, %v61_v4  ;;  %1295 = vmatpush3.msra.mxu0 %v61_v4  ;;  %1280 = vmatpush3.msra.mxu1 %v61_v4  ;;  %v514_v16 = vand.u32 4294901760, %v1824_v8  ;;  %v517_v17 = vand.u32 4294901760, %v42_v9  ;;  %v1834_v18 = vld [vmem:[#allocation5 + $0x38] sm:$0xff]  ;;  %v46_v23 = vld [vmem:[#allocation5 + $0x40] sm:$0xff] }
  0x2a   :  { %v1831_v15 = vsub.f32 %v1821_v3, %v508_v7  ;;  %1284 = vmatprep.subr.mxu1 %v1765_v0  ;;  %1299 = vmatprep.subr.mxu0 %v1765_v0  ;;  %v1838_v20 = vsub.f32 %v40_v6, %v511_v11  ;;  %v520_v21 = vand.u32 4294901760, %v1826_v12  ;;  %v523_v22 = vand.u32 4294901760, %v1828_v13  ;;  %v47_v24 = vld [vmem:[#allocation5 + $0x48] sm:$0xff]  ;;  %v48_v29 = vld [vmem:[#allocation5 + $0x50] sm:$0xff]  ;;  %v49_v50 = vld [vmem:[#allocation5 + $0x58] sm:$0xff]  ;;  %s1155_s6 = sshll.u32 %s1768_s1, 4  ;;  %s1156_s6 = int_to_ptr.vmem [resolvable:$true] %s1155_s6 }
  0x2b   :  { %v127_v19 = vsub.f32 %v58_v5, %v126_v10  ;;  %v139_v25 = vand.u32 4294901760, %v138_v14  ;;  %v1843_v26 = vsub.f32 %v1824_v8, %v514_v16  ;;  %v1845_v27 = vsub.f32 %v42_v9, %v517_v17  ;;  %v50_v51 = vld [vmem:[#allocation5 + $0x60] sm:$0xff]  ;;  %v51_v57 = vld [vmem:[#allocation5 + $0x68] sm:$0xff]  ;;  %v52_v58 = vld [vmem:[#allocation5 + $0x70] sm:$0xff]  ;;  %s1733_s7 = scalar_lea.vmem %s1156_s6, 128  ;;  %p1738_p3 = scmp.lt.s32.totalorder %s1156_s6, %s1156_s6 }
  0x2c   :  { %v526_v28 = vand.u32 4294901760, %v1834_v18  ;;  %v1849_v31 = vsub.f32 %v1826_v12, %v520_v21  ;;  %v1852_v32 = vsub.f32 %v1828_v13, %v523_v22  ;;  %v529_v34 = vand.u32 4294901760, %v46_v23  ;;  %v53_v62 = vld [vmem:[#allocation5 + $0x78] sm:$0xff]  ;;  %v54_v63 = vld [vmem:[#allocation5 + $0x80] sm:$0xff]  ;;  %p1734_p2 = scmp.ne.s32.totalorder %s1156_s6, %s1733_s7  ;;  %p1739_p4 = scmp.lt.s32.totalorder %s1733_s7, %s1733_s7 }
  0x2d   :  { %v128_v30 = vand.u32 4294901760, %v127_v19  ;;  %v140_v33 = vsub.f32 %v138_v14, %v139_v25  ;;  %v532_v36 = vand.u32 4294901760, %v47_v24  ;;  %v535_v38 = vand.u32 4294901760, %v48_v29 }
  0x2e   :  { %v1855_v35 = vsub.f32 %v1834_v18, %v526_v28  ;;  %v1859_v40 = vsub.f32 %v46_v23, %v529_v34  ;;  %v1875_v45 = vpack.c.bf16 %v511_v11, %v508_v7  ;;  %v1881_v46 = vpack.c.bf16 %v517_v17, %v514_v16  ;;  %p1740_p5 = por %p1739_p4, %p1738_p3 }
  0x2f   :  { %1297 = vmatmul.mubr.f32.vlgmr.msra.gmra.mrb[0].mxu0 %v128_v30  ;;  %v129_v37 = vsub.f32 %v127_v19, %v128_v30  ;;  %v141_v39 = vand.u32 4294901760, %v140_v33  ;;  %v1861_v41 = vsub.f32 %v47_v24, %v532_v36  ;;  %v1864_v43 = vsub.f32 %v48_v29, %v535_v38 }
  0x30   :  { %1300 = vmatpush3.msra.mxu0 %v139_v25  ;;  %1301 = vmatprep.mubr.msk.f32.mxu0 %vm1766_vm0, %v1765_v0  ;;  %v1887_v47 = vpack.c.bf16 %v523_v22, %v520_v21  ;;  %v1895_v48 = vpack.c.bf16 %v529_v34, %v526_v28  ;;  %v1901_v49 = vpack.c.bf16 %v535_v38, %v532_v36  ;;  %v538_v52 = vand.u32 4294901760, %v49_v50  ;;  %p1741_p6 = pnand %p1740_p5, %p1734_p2 }
  0x31   :  { %v130_v42 = vand.u32 4294901760, %v129_v37  ;;  %1304 = vmatprep.subr.mxu0 %v1765_v0  ;;  %v541_v53 = vand.u32 4294901760, %v50_v51  ;;  %v544_v59 = vand.u32 4294901760, %v51_v57  ;;  %v547_v60 = vand.u32 4294901760, %v52_v58 }
  0x32   :  { %v1911_v55 = vsub.f32 %v49_v50, %v538_v52  ;;  %v550_v1 = vand.u32 4294901760, %v53_v62  ;;  %v553_v2 = vand.u32 4294901760, %v54_v63  ;;  %v608_v5 = vand.u32 4294901760, %v1838_v20 }
  0x33   :  { %1282 = vmatmul.mubr.f32.vlgmr.msra.gmra.mrb[0].mxu1 %v130_v42  ;;  %v1909_v54 = vpack.c.bf16 %v541_v53, %v538_v52  ;;  %v1913_v56 = vsub.f32 %v50_v51, %v541_v53  ;;  %v1919_v61 = vpack.c.bf16 %v547_v60, %v544_v59  ;;  %v1937_v9 = vsub.f32 %v51_v57, %v544_v59 }
  0x34   :  { %1285 = vmatpush3.msra.mxu1 %v141_v39  ;;  %1286 = vmatprep.mubr.msk.f32.mxu1 %vm1766_vm0, %v1765_v0  ;;  %v1925_v3 = vpack.c.bf16 %v553_v2, %v550_v1  ;;  %v609_v8 = vsub.f32 %v1838_v20, %v608_v5  ;;  %v1941_v11 = vsub.f32 %v53_v62, %v550_v1  ;;  %v615_v16 = vand.u32 4294901760, %v1843_v26 }
  0x35   :  { %1289 = vmatprep.subr.mxu1 %v1765_v0  ;;  %v1943_v12 = vsub.f32 %v54_v63, %v553_v2  ;;  %v622_v17 = vand.u32 4294901760, %v1845_v27  ;;  %v629_v25 = vand.u32 4294901760, %v1849_v31  ;;  %v636_v28 = vand.u32 4294901760, %v1852_v32 }
  0x36   :  { %v616_v21 = vsub.f32 %v1843_v26, %v615_v16  ;;  %v643_v38 = vand.u32 4294901760, %v1855_v35  ;;  %v650_v39 = vand.u32 4294901760, %v1859_v40  ;;  %v664_v59 = vand.u32 4294901760, %v1864_v43 }
  0x37   :  { %1302 = vmatmul.mubr.f32.vlgmr.msra.gmra.mrb[0].mxu0 %v126_v10  ;;  %v623_v22 = vsub.f32 %v1845_v27, %v622_v17  ;;  %v1957_v30 = vpack.c.bf16 %v636_v28, %v629_v25  ;;  %v630_v33 = vsub.f32 %v1849_v31, %v629_v25  ;;  %v637_v34 = vsub.f32 %v1852_v32, %v636_v28 }
  0x38   :  { %1305 = vmatpush3.msra.mxu0 %v61_v4  ;;  %1306 = vmatprep.mubr.msk.f32.mxu0 %vm1766_vm0, %v1765_v0  ;;  %v601_v4 = vand.u32 4294901760, %v1831_v15  ;;  %v617_v23 = vand.u32 4294901760, %v616_v21  ;;  %v1965_v50 = vpack.c.bf16 %v650_v39, %v643_v38  ;;  %v644_v51 = vsub.f32 %v1855_v35, %v643_v38 }
  0x39   :  { %1519 = vmatprep.subr.bf16.mxu0 %v1767_v44  ;;  %v624_v24 = vand.u32 4294901760, %v623_v22  ;;  %v631_v36 = vand.u32 4294901760, %v630_v33  ;;  %v638_v37 = vand.u32 4294901760, %v637_v34  ;;  %v651_v52 = vsub.f32 %v1859_v40, %v650_v39 }
  0x3a   :  { %v1933_v6 = vpack.c.bf16 %v608_v5, %v601_v4  ;;  %v602_v7 = vsub.f32 %v1831_v15, %v601_v4  ;;  %v645_v53 = vand.u32 4294901760, %v644_v51  ;;  %v665_v1 = vsub.f32 %v1864_v43, %v664_v59 }
  0x3b   :  { %1287 = vmatmul.mubr.f32.vlgmr.msra.gmra.mrb[0].mxu1 %v126_v10  ;;  %v1955_v29 = vpack.c.bf16 %v624_v24, %v617_v23  ;;  %v1963_v42 = vpack.c.bf16 %v638_v37, %v631_v36  ;;  %v652_v57 = vand.u32 4294901760, %v651_v52  ;;  %v671_v5 = vand.u32 4294901760, %v1911_v55 }
  0x3c   :  { %1290 = vmatpush3.msra.mxu1 %v138_v14  ;;  %1291 = vmatprep.mubr.msk.f32.mxu1 %vm1766_vm0, %v1765_v0  ;;  %v603_v13 = vand.u32 4294901760, %v602_v7  ;;  %v610_v14 = vand.u32 4294901760, %v609_v8  ;;  %v666_v4 = vand.u32 4294901760, %v665_v1  ;;  %v678_v7 = vand.u32 4294901760, %v1913_v56 }
  0x3d   :  { %1591 = vmatprep.subr.bf16.mxu1 %v1767_v44  ;;  %v685_v22 = vand.u32 4294901760, %v1937_v9  ;;  %v699_v37 = vand.u32 4294901760, %v1941_v11  ;;  %v706_v38 = vand.u32 4294901760, %v1943_v12  ;;  %v1571_v1 = vpack.c.bf16 %v1845_v27, %v1843_v26 }
  0x3e   :  { %v1947_v18 = vpack.c.bf16 %v610_v14, %v603_v13  ;;  %v1981_v13 = vpack.c.bf16 %v678_v7, %v671_v5  ;;  %v672_v14 = vsub.f32 %v1911_v55, %v671_v5  ;;  %v1580_v5 = vpack.c.bf16 %v1864_v43, %v1861_v41 }
  0x3f   :  { %1307 = vmatmul.mubr.f32.vlgmr.msra.gmra.mrb[0].mxu0 %v126_v10  ;;  %v1939_v10 = vsub.f32 %v52_v58, %v547_v60  ;;  %v657_v58 = vand.u32 4294901760, %v1861_v41  ;;  %v1971_v60 = vpack.c.bf16 %v652_v57, %v645_v53  ;;  %v686_v28 = vsub.f32 %v1937_v9, %v685_v22 }
  0x40   :  { %1521 = vmatpush3.bf16.msra.mxu0 %v1875_v45  ;;  %1341 = vmatprep.mubr.msk.f32.mxu0 %vm1766_vm0, %v1765_v0  ;;  %v1637_v51 = vpack.c.bf16 %v706_v38, %v699_v37  ;;  %v700_v52 = vsub.f32 %v1941_v11, %v699_v37  ;;  %v707_v53 = vsub.f32 %v1943_v12, %v706_v38 }
  0x41   :  { %1522 = vmatprep.subr.bf16.mxu0 %v1767_v44  ;;  %v1973_v62 = vpack.c.bf16 %v664_v59, %v657_v58  ;;  %v658_v63 = vsub.f32 %v1861_v41, %v657_v58  ;;  %v692_v23 = vand.u32 4294901760, %v1939_v10  ;;  %v687_v34 = vand.u32 4294901760, %v686_v28 }
  0x42   :  { %v701_v57 = vand.u32 4294901760, %v700_v52  ;;  %v708_v58 = vand.u32 4294901760, %v707_v53 }
  0x43   :  { %1292 = vmatmul.mubr.f32.vlgmr.msra.gmra.mrb[0].mxu1 %v127_v19  ;;  %v1949_v19 = vpack.c.bf16 %v622_v17, %v615_v16  ;;  %v659_v2 = vand.u32 4294901760, %v658_v63  ;;  %v679_v16 = vsub.f32 %v1913_v56, %v678_v7  ;;  %v673_v17 = vand.u32 4294901760, %v672_v14 }
  0x44   :  { %1593 = vmatpush3.bf16.msra.mxu1 %v1875_v45  ;;  %1524 = vmatpush3.bf16.msra.mxu0 %v1881_v46  ;;  %v1634_v25 = vpack.c.bf16 %v692_v23, %v685_v22  ;;  %v693_v33 = vsub.f32 %v1939_v10, %v692_v23  ;;  %v1565_v59 = vpack.c.bf16 %v708_v58, %v701_v57 }
  0x45   :  { %1594 = vmatprep.subr.bf16.mxu1 %v1767_v44  ;;  %1525 = vmatprep.subr.bf16.mxu0 %v1767_v44  ;;  %v1979_v8 = vpack.c.bf16 %v666_v4, %v659_v2  ;;  %v680_v21 = vand.u32 4294901760, %v679_v16  ;;  %v1568_v63 = vpack.c.bf16 %v1838_v20, %v1831_v15  ;;  %v1574_v2 = vpack.c.bf16 %v1852_v32, %v1849_v31 }
  0x46   :  { %1446 = vmatprep.mubr.msk.f32.mxu1 %vm1766_vm0, %v1765_v0  ;;  %v694_v36 = vand.u32 4294901760, %v693_v33  ;;  %v1577_v4 = vpack.c.bf16 %v1859_v40, %v1855_v35  ;;  %v1583_v7 = vpack.c.bf16 %v1913_v56, %v1911_v55  ;;  %v1586_v14 = vpack.c.bf16 %v1939_v10, %v1937_v9 }
  0x47   :  { %v1559_v24 = vpack.c.bf16 %v680_v21, %v673_v17  ;;  %v1589_v15 = vpack.c.bf16 %v1943_v12, %v1941_v11 }
  0x48   :  { %1596 = vmatpush3.bf16.msra.mxu1 %v1881_v46  ;;  %1527 = vmatpush3.bf16.msra.mxu0 %v1887_v47  ;;  %v1562_v39 = vpack.c.bf16 %v694_v36, %v687_v34 }
  0x49   :  { %1597 = vmatprep.subr.bf16.mxu1 %v1767_v44  ;;  %1528 = vmatprep.subr.bf16.mxu0 %v1767_v44 }
  0x4c   :  { %1599 = vmatpush3.bf16.msra.mxu1 %v1887_v47  ;;  %1530 = vmatpush3.bf16.msra.mxu0 %v1895_v48 }
  0x4d   :  { %1600 = vmatprep.subr.bf16.mxu1 %v1767_v44  ;;  %1531 = vmatprep.subr.bf16.mxu0 %v1767_v44 }
  0x50   :  { %1602 = vmatpush3.bf16.msra.mxu1 %v1895_v48  ;;  %1533 = vmatpush3.bf16.msra.mxu0 %v1901_v49 }
  0x51   :  { %1603 = vmatprep.subr.bf16.mxu1 %v1767_v44  ;;  %1534 = vmatprep.subr.bf16.mxu0 %v1767_v44 }
  0x54   :  { %1605 = vmatpush3.bf16.msra.mxu1 %v1901_v49  ;;  %1536 = vmatpush3.bf16.msra.mxu0 %v1909_v54 }
  0x55   :  { %1606 = vmatprep.subr.bf16.mxu1 %v1767_v44  ;;  %1537 = vmatprep.subr.bf16.mxu0 %v1767_v44 }
  0x58   :  { %1608 = vmatpush3.bf16.msra.mxu1 %v1909_v54  ;;  %1539 = vmatpush3.bf16.msra.mxu0 %v1919_v61 }
  0x59   :  { %1609 = vmatprep.subr.bf16.mxu1 %v1767_v44  ;;  %1540 = vmatprep.subr.bf16.mxu0 %v1767_v44 }
  0x5c   :  { %1611 = vmatpush3.bf16.msra.mxu1 %v1919_v61  ;;  %1542 = vmatpush3.bf16.msra.mxu0 %v1925_v3 }
  0x5d   :  { %1612 = vmatprep.subr.bf16.mxu1 %v1767_v44  ;;  %1543 = vmatprep.subr.bf16.mxu0 %v1767_v44 }
  0x60   :  { %1614 = vmatpush3.bf16.msra.mxu1 %v1925_v3 }
  0x61   :  { %1615 = vmatprep.subr.bf16.mxu1 %v1767_v44 }
 0x112   :  { %v502_v20 = vpop.f32.mrb[0].mxu0 }
 0x113   :  { %v1308_v16 = vpop.f32.mrb[1].mxu0 }
 0x116   :  { %v282_v17 = vpop.f32.mrb[0].mxu1 }
 0x117   :  { %v1663_v21 = vadd.f32 %v502_v20, %v282_v17  ;;  %v1293_v22 = vpop.f32.mrb[1].mxu1 }
 0x119   :  { %v506_v23 = vmax.f32 %v1663_v21, 0.0 }
 0x11b   :  { %v2009_v28 = vand.u32 4294901760, %v506_v23 }
 0x11d   :  { %v2012_v33 = vsub.f32 %v506_v23, %v2009_v28 }
 0x11f   :  { %v590_v34 = vand.u32 4294901760, %v2012_v33 }
 0x121   :  { %v591_v36 = vsub.f32 %v2012_v33, %v590_v34  ;;  %1447 = vmatmul.mubr.f32.vlgmr.msra.gmra.mrb[2].mxu1 %v590_v34 }
 0x122   :  { %1617 = vmatpush3.bf16.msra.mxu1 %v1933_v6  ;;  %1481 = vmatprep.mubr.msk.f32.mxu1 %vm1766_vm0, %v1765_v0 }
 0x123   :  { %1618 = vmatprep.subr.bf16.mxu1 %v1767_v44  ;;  %v592_v37 = vand.u32 4294901760, %v591_v36 }
 0x125   :  { %1342 = vmatmul.mubr.f32.vlgmr.msra.gmra.mrb[2].mxu0 %v592_v37 }
 0x126   :  { %1545 = vmatpush3.bf16.msra.mxu0 %v1947_v18  ;;  %1620 = vmatpush3.bf16.msra.mxu1 %v1949_v19 }
 0x127   :  { %1546 = vmatprep.subr.bf16.mxu0 %v1767_v44  ;;  %1621 = vmatprep.subr.bf16.mxu1 %v1767_v44 }
 0x128   :  { %1376 = vmatprep.mubr.msk.f32.mxu0 %vm1766_vm0, %v1765_v0 }
 0x12a   :  { %1548 = vmatpush3.bf16.msra.mxu0 %v1955_v29  ;;  %1623 = vmatpush3.bf16.msra.mxu1 %v1957_v30 }
 0x12b   :  { %1549 = vmatprep.subr.bf16.mxu0 %v1767_v44  ;;  %1624 = vmatprep.subr.bf16.mxu1 %v1767_v44 }
 0x12e   :  { %1551 = vmatpush3.bf16.msra.mxu0 %v1963_v42  ;;  %1626 = vmatpush3.bf16.msra.mxu1 %v1965_v50 }
 0x12f   :  { %1552 = vmatprep.subr.bf16.mxu0 %v1767_v44  ;;  %1627 = vmatprep.subr.bf16.mxu1 %v1767_v44 }
 0x132   :  { %1554 = vmatpush3.bf16.msra.mxu0 %v1971_v60  ;;  %1629 = vmatpush3.bf16.msra.mxu1 %v1973_v62 }
 0x133   :  { %1555 = vmatprep.subr.bf16.mxu0 %v1767_v44  ;;  %1630 = vmatprep.subr.bf16.mxu1 %v1767_v44 }
 0x136   :  { %1557 = vmatpush3.bf16.msra.mxu0 %v1979_v8  ;;  %1632 = vmatpush3.bf16.msra.mxu1 %v1981_v13 }
 0x137   :  { %1558 = vmatprep.subr.bf16.mxu0 %v1767_v44  ;;  %1633 = vmatprep.subr.bf16.mxu1 %v1767_v44 }
 0x13a   :  { %1560 = vmatpush3.bf16.msra.mxu0 %v1559_v24  ;;  %1635 = vmatpush3.bf16.msra.mxu1 %v1634_v25 }
 0x13b   :  { %1561 = vmatprep.subr.bf16.mxu0 %v1767_v44  ;;  %1636 = vmatprep.subr.bf16.mxu1 %v1767_v44 }
 0x13e   :  { %1563 = vmatpush3.bf16.msra.mxu0 %v1562_v39  ;;  %1638 = vmatpush3.bf16.msra.mxu1 %v1637_v51 }
 0x13f   :  { %1564 = vmatprep.subr.bf16.mxu0 %v1767_v44  ;;  %1639 = vmatprep.subr.bf16.mxu1 %v1767_v44 }
 0x141   :  { %1482 = vmatmul.mubr.f32.vlgmr.msra.gmra.mrb[2].mxu1 %v2009_v28 }
 0x142   :  { %1566 = vmatpush3.bf16.msra.mxu0 %v1565_v59  ;;  %1641 = vmatpush3.bf16.msra.mxu1 %v1875_v45 }
 0x143   :  { %1567 = vmatprep.subr.bf16.mxu0 %v1767_v44  ;;  %1642 = vmatprep.subr.bf16.mxu1 %v1767_v44 }
 0x144   :  { %1516 = vmatprep.mubr.msk.f32.mxu1 %vm1766_vm0, %v1765_v0 }
 0x145   :  { %1377 = vmatmul.mubr.f32.vlgmr.msra.gmra.mrb[2].mxu0 %v2009_v28 }
 0x146   :  { %1569 = vmatpush3.bf16.msra.mxu0 %v1568_v63  ;;  %1644 = vmatpush3.bf16.msra.mxu1 %v1881_v46 }
 0x147   :  { %1570 = vmatprep.subr.bf16.mxu0 %v1767_v44  ;;  %1645 = vmatprep.subr.bf16.mxu1 %v1767_v44 }
 0x148   :  { %1411 = vmatprep.mubr.msk.f32.mxu0 %vm1766_vm0, %v1765_v0 }
 0x14a   :  { %1572 = vmatpush3.bf16.msra.mxu0 %v1571_v1  ;;  %1647 = vmatpush3.bf16.msra.mxu1 %v1887_v47 }
 0x14b   :  { %1573 = vmatprep.subr.bf16.mxu0 %v1767_v44  ;;  %1648 = vmatprep.subr.bf16.mxu1 %v1767_v44 }
 0x14e   :  { %1575 = vmatpush3.bf16.msra.mxu0 %v1574_v2  ;;  %1650 = vmatpush3.bf16.msra.mxu1 %v1895_v48 }
 0x14f   :  { %1576 = vmatprep.subr.bf16.mxu0 %v1767_v44  ;;  %1651 = vmatprep.subr.bf16.mxu1 %v1767_v44 }
 0x152   :  { %1578 = vmatpush3.bf16.msra.mxu0 %v1577_v4  ;;  %1653 = vmatpush3.bf16.msra.mxu1 %v1901_v49 }
 0x153   :  { %1579 = vmatprep.subr.bf16.mxu0 %v1767_v44  ;;  %1654 = vmatprep.subr.bf16.mxu1 %v1767_v44 }
 0x156   :  { %1581 = vmatpush3.bf16.msra.mxu0 %v1580_v5  ;;  %1656 = vmatpush3.bf16.msra.mxu1 %v1909_v54 }
 0x157   :  { %1582 = vmatprep.subr.bf16.mxu0 %v1767_v44  ;;  %1657 = vmatprep.subr.bf16.mxu1 %v1767_v44 }
 0x15a   :  { %1584 = vmatpush3.bf16.msra.mxu0 %v1583_v7  ;;  %1659 = vmatpush3.bf16.msra.mxu1 %v1919_v61 }
 0x15b   :  { %1585 = vmatprep.subr.bf16.mxu0 %v1767_v44  ;;  %1660 = vmatprep.subr.bf16.mxu1 %v1767_v44 }
 0x15e   :  { %1587 = vmatpush3.bf16.msra.mxu0 %v1586_v14  ;;  %1662 = vmatpush3.bf16.msra.mxu1 %v1925_v3 }
 0x15f   :  { %1588 = vmatprep.subr.bf16.mxu0 %v1767_v44 }
 0x161   :  { %1517 = vmatmul.mubr.f32.vlgmr.msra.gmra.mrb[2].mxu1 %v2009_v28 }
 0x162   :  { %1590 = vmatpush3.bf16.msra.mxu0 %v1589_v15 }
 0x165   :  { %1412 = vmatmul.mubr.f32.vlgmr.msra.gmra.mrb[2].mxu0 %v2012_v33 }
 0x234   :  { %v1144_v0 = vpop.f32.mrb[2].mxu1 }
 0x235   :  { %v1518_v26 = vpop.f32.mrb[3].mxu1 }
 0x238   :  { %v849_v27 = vpop.f32.mrb[2].mxu0 }
 0x239   :  { %v1664_v31 = vadd.f32 %v1144_v0, %v849_v27  ;;  %v1413_v32 = vpop.f32.mrb[3].mxu0 }
 0x23b   :  { %1148 = vst [vmem:[#allocation7] sm:$0xff] %v1664_v31 }
 0x23c   :  { %1744 = shalt.err (!%p1741_p6)
}
 0x23d   :  { %s1745_s10 = scalar_lea.hbm %s2112_s2, 128 }
 0x23e   :  { %p1746_p7 = scmp.ne.s32.totalorder %s2112_s2, %s1745_s10  ;;  %p1749_p8 = scmp.lt.u32.totalorder %s1745_s10, %s2112_s2 }
 0x240   :  { %p1751_p9 = pnand %p1749_p8, %p1746_p7 }
 0x242   :  { %1754 = shalt.err (!%p1751_p9)
}
 0x243   :  { %1158 = dma.vmem_to_hbm [thread:$0]  %s1156_s6, 128, %s2112_s2, [#allocation4]  }
 0x244   :  { %1759 = dma.done.wait [#allocation4], 128  }
 0x245   :  { %1760 = vsyncadd [#allocation4], 4294967168 }
 0x246   :  { %1162 = vsyncpa [#allocation3], 1 }
 0x247   :  { %1163 = vsyncpa [#allocation6], 1 }
 0x248   :  { %1164 = vsyncpa [#allocation4], 1 }

</bundles_post_ra>
